<compile_context>
chip_gen: v6e
topology: v6e:2x2x1
jax: 0.10.0
libtpu: 0.0.40
codegen_flags: <defaults>
</compile_context>

<pallas_src>
import functools

import jax
import jax.numpy as jnp
from jax.experimental import pallas as pl
from jax.experimental.pallas import tpu as pltpu

_SINGLE_BLOCK_BYTES = 1 * 1024 * 1024   # below this a one-step grid is fine


@functools.lru_cache(maxsize=None)
def _block_params():
    """Return (target_block_bytes, vmem_limit_bytes), generation-aware."""
    target, limit = 4 * 1024 * 1024, 32 * 1024 * 1024       # safe everywhere
    get_info = getattr(pltpu, "get_tpu_info", None)
    if get_info is not None:
        try:
            vmem = getattr(get_info(), "vmem_capacity_bytes", None)
            if vmem:
                if vmem >= 96 * 1024 * 1024:   # v5e / v6e: 128 MiB physical VMEM
                    target, limit = 8 * 1024 * 1024, 64 * 1024 * 1024
                else:                          # v7x: 64 MiB physical VMEM
                    target, limit = 8 * 1024 * 1024, 48 * 1024 * 1024
        except Exception:
            pass
    return target, limit


def _relu_kernel(x_ref, o_ref):
    # Single VPU op; PyTorch ReLU semantics (max(0, x)), NaN propagates.
    o_ref[...] = jnp.maximum(x_ref[...], 0)


def _launch(x2d: jax.Array, tr: int, donate: bool = False) -> jax.Array:
    rows, cols = x2d.shape
    _, vmem_limit = _block_params()
    return pl.pallas_call(
        _relu_kernel,
        out_shape=jax.ShapeDtypeStruct((rows, cols), x2d.dtype),
        grid_spec=pltpu.PrefetchScalarGridSpec(
            num_scalar_prefetch=0,
            grid=(pl.cdiv(rows, tr),),              # partial last block is masked
            in_specs=[pl.BlockSpec((tr, cols), lambda i: (i, 0))],
            out_specs=pl.BlockSpec((tr, cols), lambda i: (i, 0)),
        ),
        compiler_params=pltpu.CompilerParams(
            dimension_semantics=("parallel",),      # shards grid across v7x's 2 TCs
            vmem_limit_bytes=vmem_limit,
        ),
        input_output_aliases=({0: 0} if donate else {}),
    )(x2d)


def _min_sublanes(dtype) -> int:
    # Sub-32-bit dtypes pack 2-4 rows per sublane; keep row tiles packed-friendly.
    itemsize = jnp.dtype(dtype).itemsize
    return max(8, 32 // max(1, itemsize))


def _pick_row_tile(rows: int, cols: int, itemsize: int, min_sub: int,
                   target_block_bytes: int) -> int:
    """Row tile near target_block_bytes; cdiv grid masks the partial last block."""
    slab_bytes = rows * cols * itemsize
    if slab_bytes <= _SINGLE_BLOCK_BYTES:
        return rows                       # one block; full-dim block is always legal
    # Cap so one block is ~target_block_bytes (multiple of min_sub).
    tr_cap = max(min_sub,
                 (target_block_bytes // (cols * itemsize)) // min_sub * min_sub)
    # Force >= 2 row blocks: both v7x TensorCores get work, DMA/compute overlap.
    tr_half = ((rows + 1) // 2 + min_sub - 1) // min_sub * min_sub
    tr = max(min_sub, min(tr_cap, tr_half))
    if tr >= rows:
        return rows
    return tr


def relu_pallas(x: jax.Array, donate: bool = False) -> jax.Array:
    """Elementwise ReLU via Pallas. Accepts any shape; preserves shape/dtype."""
    orig_shape = x.shape
    dtype = x.dtype
    n = x.size
    if n == 0:
        return x

    itemsize = jnp.dtype(dtype).itemsize
    min_sub = _min_sublanes(dtype)
    target_bytes, _ = _block_params()

    # ---- Fast path (n % 128 == 0): no padding, no extra HBM passes. --------
    # Present the flat data as a wide, lane-dense (rows, cols) slab.
    for cols in (4096, 2048, 1024, 512, 256, 128):
        if n % cols == 0:
            rows = n // cols
            tr = _pick_row_tile(rows, cols, itemsize, min_sub, target_bytes)
            out2d = _launch(x.reshape(rows, cols), tr, donate=donate)
            return out2d.reshape(orig_shape)

    # ---- Ragged fallback (n % 128 != 0): pad flat tail to next multiple of
    # 128 only. ~3x HBM traffic (pad copy + kernel + slice copy); rare.
    cols = 128
    padded_n = ((n + cols - 1) // cols) * cols
    flat = jnp.pad(x.reshape(-1), (0, padded_n - n))
    rows = padded_n // cols
    tr = _pick_row_tile(rows, cols, itemsize, min_sub, target_bytes)
    out2d = _launch(flat.reshape(rows, cols), tr, donate=donate)
    return out2d.reshape(-1)[:n].reshape(orig_shape)


# TODO(synk): backward() (dl_dx * (input > 0)) is not part of the requested
# forward pass; it would be a second, identical-structure elementwise kernel.

if __name__ == "__main__":
    key = jax.random.PRNGKey(0)
    relu = jax.jit(relu_pallas, static_argnames=("donate",))

    # 1) Small NCHW input consistent with the project's conv modules (fast path,
    #    single block).
    x = jax.random.normal(key, (2, 4, 16, 16), dtype=jnp.float32)
    y = relu(x)
    jax.block_until_ready(y)
    y_ref = x * (x > 0).astype(x.dtype)
    assert y.shape == x.shape and y.dtype == x.dtype
    assert jnp.allclose(y, y_ref), "mismatch vs reference ReLU (fast path)"

    # 2) Medium activation exercising the cdiv grid with a masked partial
    #    last row-block (rows not a multiple of the row tile).
    xm = jax.random.normal(jax.random.PRNGKey(2), (3, 4, 160, 160), dtype=jnp.float32)
    ym = relu(xm)
    jax.block_until_ready(ym)
    ym_ref = xm * (xm > 0).astype(xm.dtype)
    assert jnp.allclose(ym, ym_ref), "mismatch vs reference ReLU (multi-block path)"

    # 3) Ragged-size input exercises the pad-to-128 fallback path.
    x2 = jax.random.normal(jax.random.PRNGKey(1), (3, 5, 7), dtype=jnp.float32)
    y2 = relu(x2)
    jax.block_until_ready(y2)
    y2_ref = x2 * (x2 > 0).astype(x2.dtype)
    assert jnp.allclose(y2, y2_ref), "mismatch vs reference ReLU (ragged path)"

    # 4) bf16 input (packed sublanes) on the fast path.
    xb = jax.random.normal(jax.random.PRNGKey(3), (2, 4, 16, 16)).astype(jnp.bfloat16)
    yb = relu(xb)
    jax.block_until_ready(yb)
    assert yb.dtype == jnp.bfloat16
    assert jnp.allclose(yb.astype(jnp.float32),
                        jnp.maximum(xb, 0).astype(jnp.float32)), \
        "mismatch vs reference ReLU (bf16 path)"

    # 5) Donated-input variant (input_output_aliases={0: 0}).
    xd = jnp.linspace(-1.0, 1.0, 8 * 256, dtype=jnp.float32).reshape(8, 256)
    yd_ref = jnp.maximum(xd, 0)
    yd = relu(xd, donate=True)
    jax.block_until_ready(yd)
    assert jnp.allclose(yd, yd_ref), "mismatch vs reference ReLU (donate path)"

    print("KERNEL_OK")
</pallas_src>

<mosaic_0001>
module attributes {stable_mosaic.version = 11 : i64} {
  func.func @_relu_kernel(%arg0: i32, %arg1: memref<1x2048xf32, #tpu.memory_space<vmem>>, %arg2: memref<1x2048xf32, #tpu.memory_space<vmem>>) attributes {dimension_semantics = [#tpu.dimension_semantics<parallel>], iteration_bounds = array<i64: 1>, scalar_prefetch = 0 : i64, scratch_operands = 0 : i64, tpu.core_type = #tpu.core_type<tc>, window_params = [{transform_indices = @transform_0, window_bounds = array<i64: 1, 2048>}, {transform_indices = @transform_1, window_bounds = array<i64: 1, 2048>}]} {
    %c0 = arith.constant 0 : index
    %c0_0 = arith.constant 0 : index
    %0 = vector.load %arg1[%c0, %c0_0] : memref<1x2048xf32, #tpu.memory_space<vmem>>, vector<1x2048xf32>
    %cst = arith.constant 0.000000e+00 : f32
    %1 = vector.broadcast %cst : f32 to vector<1x2048xf32>
    %2 = arith.maximumf %0, %1 : vector<1x2048xf32>
    %c0_1 = arith.constant 0 : index
    %c0_2 = arith.constant 0 : index
    %3 = vector.load %arg2[%c0_1, %c0_2] : memref<1x2048xf32, #tpu.memory_space<vmem>>, vector<1x2048xf32>
    tpu.vector_store %arg2[%c0_1, %c0_2], %2 {strides = array<i32>} : memref<1x2048xf32, #tpu.memory_space<vmem>>, vector<1x2048xf32>,
    return
  }
  func.func @transform_0(%arg0: i32) -> (i32, i32) {
    %c0_i32 = arith.constant 0 : i32
    %c0_i32_0 = arith.constant 0 : i32
    return %arg0, %c0_i32 : i32, i32
  }
  func.func @transform_1(%arg0: i32) -> (i32, i32) {
    %c0_i32 = arith.constant 0 : i32
    %c0_i32_0 = arith.constant 0 : i32
    return %arg0, %c0_i32 : i32, i32
  }
}

</mosaic_0001>

<bundles_post_ra>
// kernel: relu_pallas.1
= control target key start
LH: loop header
LB: loop body
LE: loop exit
PB: predicated region body
PF: predicated region fallthrough
CT: control target
= control target key end

     0   :  { %s40_s0 = inlined_call_operand.vmem [shape: f32[1,2048], index: 0, kind: input, shape index: {}]   ;;  %s41_s1 = inlined_call_operand.vmem [shape: f32[1,2048], index: 1, kind: output, shape index: {}]  }
   0x1   :  { %v8_v0 = vld [vmem:[%s40_s0] sm:$0xff]  ;;  %v9_v1 = vld [vmem:[%s40_s0 + $0x8] sm:$0xff] }
   0x2   :  { %v10_v2 = vmax.f32 %v8_v0, 0.0  ;;  %v11_v3 = vmax.f32 %v9_v1, 0.0 }
   0x4   :  { %12 = vst [vmem:[%s41_s1] sm:$0xff] %v10_v2  ;;  %13 = vst [vmem:[%s41_s1 + $0x8] sm:$0xff] %v11_v3 }

</bundles_post_ra>
